<compile_context>
chip_gen: v5e
topology: v5e:2x2
jax: 0.10.0
libtpu: 0.0.40
codegen_flags: <defaults>
</compile_context>

<pallas_src>
import random
from functools import partial

import numpy as np
import jax
import jax.numpy as jnp
from jax.experimental import pallas as pl
from jax.experimental.pallas import tpu as pltpu

reverse_token_dic = {0: 'spatial-then-temporal',
                     1: 'spatial-temporal-parallely',
                     2: 'temporal-then-spatial'}
token_dic = {'spatial-then-temporal': 0,
             'spatial-temporal-parallely': 1,
             'temporal-then-spatial': 2}


# ----------------------------- Pallas kernel -------------------------------

def _make_argmax_kernel(n_rows: int, n_cols: int):
    """Row-wise argmax over the last (choice) axis, fully scalar-unit.

    m_ref: (n_rows * n_cols,) f32 in SMEM  (flat 1-D: minimal SMEM padding).
    o_ref: (n_rows,)          i32 in SMEM.
    First-occurrence semantics; NaN treated as maximal (first NaN wins),
    matching torch.argmax, and never emits an out-of-range index.
    """
    def kernel(m_ref, o_ref):
        for i in range(n_rows):                 # static unroll, sizes are tiny
            base = i * n_cols
            best_val = m_ref[base]
            best_idx = jnp.int32(0)
            for j in range(1, n_cols):          # static unroll
                v = m_ref[base + j]
                v_is_nan = v != v               # scalar-safe isnan
                best_is_nan = best_val != best_val
                take = (v > best_val) | (v_is_nan & jnp.logical_not(best_is_nan))
                best_val = jnp.where(take, v, best_val)
                best_idx = jnp.where(take, jnp.int32(j), best_idx)
            o_ref[i] = best_idx
    return kernel


@jax.jit
def pallas_argmax_last(matrix: jax.Array) -> jax.Array:
    """(..., L, C) float -> (..., L) int32 row-wise argmax.

    Any leading batch dims are folded into the row axis, so a whole batch of
    evolution steps is a single Pallas dispatch (and a single D2H fetch by the
    caller).  Result lives in SMEM — no padded VMEM tile, no HBM writeback of
    padding.
    """
    *lead, L, C = matrix.shape
    n_rows = L
    for d in lead:
        n_rows *= d
    flat = matrix.astype(jnp.float32).reshape(n_rows * C)
    out = pl.pallas_call(
        _make_argmax_kernel(n_rows, C),
        out_shape=jax.ShapeDtypeStruct((n_rows,), jnp.int32),
        in_specs=[pl.BlockSpec(memory_space=pltpu.MemorySpace.SMEM)],
        out_specs=pl.BlockSpec(memory_space=pltpu.MemorySpace.SMEM),
    )(flat)
    return out.reshape(*lead, L)


# --------------------------- Host-side glue logic ---------------------------

class Sample:
    def __init__(self, dic, type='mae'):
        self.sample = dic
        self.type = type

    def __lt__(self, other):
        return self.sample[self.type] < other.sample[self.type]

    def mutate(self):
        pos = random.randint(0, 5)
        op = random.randint(0, 2)
        model = self.sample['model']
        model['Layer_' + str(pos + 1)] = reverse_token_dic[op]
        return model

    def __str__(self):
        return f'Model({self.sample})'


class Metrics:
    """Minimal stand-in for the metrics object: get_value() -> dict with 'mae'."""
    def __init__(self, mae):
        self.mae = float(mae)

    def get_value(self):
        return {'mae': self.mae}


class Evolution:
    def __init__(self, strategy='Normal', opt_layers=6, choice=3, popu_size=5):
        self._samples = []
        self.opt_layers = opt_layers
        self.choice = choice
        self.popu_size = popu_size
        self.strategy = strategy

    def add_sample(self, dic):
        self._samples.append(Sample(dic))

    def elimit_sample(self):
        if self.strategy == 'Normal':
            self._samples.remove(max(self._samples))
        elif self.strategy == 'Age':
            self._samples.remove(self._samples[0])

    def get_best(self):
        return min(self._samples)

    def reproduce(self):
        return self.get_best().mutate()

    def __len__(self):
        return len(self._samples)

    # -- matrix -> prompt dict (argmax runs on device, one D2H sync) --------
    def matrix2prompt(self, matrix, metrics, precomputed_ops=None):
        values = metrics.get_value()
        if precomputed_ops is None:
            ops = pallas_argmax_last(matrix)        # Pallas kernel dispatch
            if hasattr(ops, "copy_to_host_async"):
                ops.copy_to_host_async()            # start D2H early
            ops_host = np.asarray(ops)              # the single blocking sync
        else:
            ops_host = np.asarray(precomputed_ops)  # batched path: already host-side
        layer_dic = {}
        for i in range(self.opt_layers):
            layer_dic['Layer_' + str(i + 1)] = reverse_token_dic[int(ops_host[i])]
        values['model'] = layer_dic
        return values

    # -- prompt dict -> 0.5 one-hot matrix (host numpy + one device_put) ----
    def prompt2matrix(self, model):
        # 72 B of data: building on host and device_put-ing is cheaper than a
        # pallas_call dispatch (perf-review item: drop the second kernel).
        pro = np.zeros((self.opt_layers, self.choice), dtype=np.float32)
        for i in range(1, self.opt_layers + 1):
            pro[i - 1, token_dic[model['Layer_' + str(i)]]] = 0.5
        return jax.device_put(pro)

    # -- reference forward: one argmax dispatch + one D2H per step ----------
    def forward(self, matrix, metrics):
        sample = self.matrix2prompt(matrix, metrics)
        self.add_sample(sample)
        if len(self._samples) > self.popu_size:
            self.elimit_sample()
        new_model = self.reproduce()
        return self.prompt2matrix(new_model)

    __call__ = forward

    # -- batched forward: ONE argmax dispatch + ONE D2H for N steps ---------
    def forward_batched(self, matrices, metrics_list):
        """Semantically identical to calling forward() sequentially per step:
        the argmax of each matrix depends only on that matrix, while the
        population / mutation bookkeeping stays strictly sequential on host."""
        stacked = jnp.stack([jnp.asarray(m) for m in matrices])
        ops = pallas_argmax_last(stacked)           # single Pallas dispatch
        if hasattr(ops, "copy_to_host_async"):
            ops.copy_to_host_async()
        ops_host = np.asarray(ops)                  # single blocking sync
        outs = []
        for step_ops, metrics in zip(ops_host, metrics_list):
            sample = self.matrix2prompt(None, metrics, precomputed_ops=step_ops)
            self.add_sample(sample)
            if len(self._samples) > self.popu_size:
                self.elimit_sample()
            new_model = self.reproduce()
            outs.append(self.prompt2matrix(new_model))
        return outs


# --------------------------------- main -------------------------------------

if __name__ == "__main__":
    key = jax.random.PRNGKey(0)
    opt_layers, choice = 6, 3
    steps = 7

    key, km_all, kv = jax.random.split(key, 3)
    maes = np.asarray(jax.device_get(jax.random.uniform(kv, (steps,), dtype=jnp.float32)))
    mkeys = jax.random.split(km_all, steps)
    matrices = [jax.random.normal(mkeys[s], (opt_layers, choice), dtype=jnp.float32)
                for s in range(steps)]

    # ---- Path A: per-step forward (one dispatch + one sync per step) ----
    random.seed(0)
    evo_a = Evolution(strategy='Normal', opt_layers=opt_layers, choice=choice, popu_size=5)
    outs_a = [np.asarray(evo_a(matrices[s], Metrics(maes[s]))) for s in range(steps)]

    # ---- Path B: batched forward (ONE dispatch + ONE sync for all steps) ----
    random.seed(0)
    evo_b = Evolution(strategy='Normal', opt_layers=opt_layers, choice=choice, popu_size=5)
    outs_b_dev = evo_b.forward_batched(matrices, [Metrics(maes[s]) for s in range(steps)])
    out = jax.block_until_ready(outs_b_dev[-1])
    outs_b = [np.asarray(o) for o in outs_b_dev]

    # Batched path must match the sequential reference exactly.
    for a, b in zip(outs_a, outs_b):
        assert np.array_equal(a, b), "batched forward diverged from sequential forward"

    # Output shape / one-0.5-per-row invariant.
    assert out.shape == (opt_layers, choice) and out.dtype == jnp.float32
    assert np.array_equal(np.asarray(out).sum(-1),
                          np.full(opt_layers, 0.5, np.float32)), \
        "each row must contain exactly one 0.5"

    # Argmax kernel vs jnp reference on NaN-free random data.
    key, km = jax.random.split(key)
    m_test = jax.random.normal(km, (opt_layers, choice), dtype=jnp.float32)
    ref = np.asarray(jnp.argmax(m_test, axis=-1)).astype(np.int32)
    got = np.asarray(pallas_argmax_last(m_test))
    assert np.array_equal(ref, got), "argmax kernel mismatch"

    # Tie semantics: first occurrence of the max wins (torch.argmax behavior).
    m_tie = jnp.asarray(np.array([[1., 1., 0.],
                                  [0., 2., 2.],
                                  [3., 3., 3.]], np.float32))
    assert np.array_equal(np.asarray(pallas_argmax_last(m_tie)),
                          np.array([0, 1, 0], np.int32)), "tie semantics mismatch"

    # NaN semantics: NaN is maximal, first NaN wins (torch.argmax behavior).
    m_nan = jnp.asarray(np.array([[1.0, np.nan, 3.0],
                                  [np.nan, np.nan, 0.0],
                                  [0.1, 0.2, 0.3]], np.float32))
    assert np.array_equal(np.asarray(pallas_argmax_last(m_nan)),
                          np.array([1, 0, 2], np.int32)), "NaN semantics mismatch"

    print("KERNEL_OK")
</pallas_src>

<mosaic_0001>
module attributes {stable_mosaic.version = 11 : i64} {
  func.func @kernel(%arg0: memref<18xf32, #tpu.memory_space<smem>>, %arg1: memref<6xi32, #tpu.memory_space<smem>>) attributes {dimension_semantics = [], scalar_prefetch = 0 : i64, scratch_operands = 0 : i64, tpu.core_type = #tpu.core_type<tc>} {
    %c0 = arith.constant 0 : index
    %0 = memref.load %arg0[%c0] : memref<18xf32, #tpu.memory_space<smem>>
    %c1 = arith.constant 1 : index
    %1 = memref.load %arg0[%c1] : memref<18xf32, #tpu.memory_space<smem>>
    %2 = arith.cmpf one, %1, %1 : f32
    %3 = arith.cmpf one, %0, %0 : f32
    %4 = arith.cmpf ogt, %1, %0 : f32
    %true = arith.constant true
    %5 = arith.xori %3, %true : i1
    %6 = arith.andi %2, %5 : i1
    %7 = arith.ori %4, %6 : i1
    %8 = arith.select %7, %1, %0 : f32
    %c1_i32 = arith.constant 1 : i32
    %c0_i32 = arith.constant 0 : i32
    %9 = arith.select %7, %c1_i32, %c0_i32 : i32
    %c2 = arith.constant 2 : index
    %10 = memref.load %arg0[%c2] : memref<18xf32, #tpu.memory_space<smem>>
    %11 = arith.cmpf one, %10, %10 : f32
    %12 = arith.cmpf one, %8, %8 : f32
    %13 = arith.cmpf ogt, %10, %8 : f32
    %true_0 = arith.constant true
    %14 = arith.xori %12, %true_0 : i1
    %15 = arith.andi %11, %14 : i1
    %16 = arith.ori %13, %15 : i1
    %c2_i32 = arith.constant 2 : i32
    %17 = arith.select %16, %c2_i32, %9 : i32
    %c0_1 = arith.constant 0 : index
    %18 = memref.load %arg1[%c0_1] : memref<6xi32, #tpu.memory_space<smem>>
    memref.store %17, %arg1[%c0_1] : memref<6xi32, #tpu.memory_space<smem>>
    %c3 = arith.constant 3 : index
    %19 = memref.load %arg0[%c3] : memref<18xf32, #tpu.memory_space<smem>>
    %c4 = arith.constant 4 : index
    %20 = memref.load %arg0[%c4] : memref<18xf32, #tpu.memory_space<smem>>
    %21 = arith.cmpf one, %20, %20 : f32
    %22 = arith.cmpf one, %19, %19 : f32
    %23 = arith.cmpf ogt, %20, %19 : f32
    %true_2 = arith.constant true
    %24 = arith.xori %22, %true_2 : i1
    %25 = arith.andi %21, %24 : i1
    %26 = arith.ori %23, %25 : i1
    %27 = arith.select %26, %20, %19 : f32
    %c1_i32_3 = arith.constant 1 : i32
    %c0_i32_4 = arith.constant 0 : i32
    %28 = arith.select %26, %c1_i32_3, %c0_i32_4 : i32
    %c5 = arith.constant 5 : index
    %29 = memref.load %arg0[%c5] : memref<18xf32, #tpu.memory_space<smem>>
    %30 = arith.cmpf one, %29, %29 : f32
    %31 = arith.cmpf one, %27, %27 : f32
    %32 = arith.cmpf ogt, %29, %27 : f32
    %true_5 = arith.constant true
    %33 = arith.xori %31, %true_5 : i1
    %34 = arith.andi %30, %33 : i1
    %35 = arith.ori %32, %34 : i1
    %c2_i32_6 = arith.constant 2 : i32
    %36 = arith.select %35, %c2_i32_6, %28 : i32
    %c1_7 = arith.constant 1 : index
    %37 = memref.load %arg1[%c1_7] : memref<6xi32, #tpu.memory_space<smem>>
    memref.store %36, %arg1[%c1_7] : memref<6xi32, #tpu.memory_space<smem>>
    %c6 = arith.constant 6 : index
    %38 = memref.load %arg0[%c6] : memref<18xf32, #tpu.memory_space<smem>>
    %c7 = arith.constant 7 : index
    %39 = memref.load %arg0[%c7] : memref<18xf32, #tpu.memory_space<smem>>
    %40 = arith.cmpf one, %39, %39 : f32
    %41 = arith.cmpf one, %38, %38 : f32
    %42 = arith.cmpf ogt, %39, %38 : f32
    %true_8 = arith.constant true
    %43 = arith.xori %41, %true_8 : i1
    %44 = arith.andi %40, %43 : i1
    %45 = arith.ori %42, %44 : i1
    %46 = arith.select %45, %39, %38 : f32
    %c1_i32_9 = arith.constant 1 : i32
    %c0_i32_10 = arith.constant 0 : i32
    %47 = arith.select %45, %c1_i32_9, %c0_i32_10 : i32
    %c8 = arith.constant 8 : index
    %48 = memref.load %arg0[%c8] : memref<18xf32, #tpu.memory_space<smem>>
    %49 = arith.cmpf one, %48, %48 : f32
    %50 = arith.cmpf one, %46, %46 : f32
    %51 = arith.cmpf ogt, %48, %46 : f32
    %true_11 = arith.constant true
    %52 = arith.xori %50, %true_11 : i1
    %53 = arith.andi %49, %52 : i1
    %54 = arith.ori %51, %53 : i1
    %c2_i32_12 = arith.constant 2 : i32
    %55 = arith.select %54, %c2_i32_12, %47 : i32
    %c2_13 = arith.constant 2 : index
    %56 = memref.load %arg1[%c2_13] : memref<6xi32, #tpu.memory_space<smem>>
    memref.store %55, %arg1[%c2_13] : memref<6xi32, #tpu.memory_space<smem>>
    %c9 = arith.constant 9 : index
    %57 = memref.load %arg0[%c9] : memref<18xf32, #tpu.memory_space<smem>>
    %c10 = arith.constant 10 : index
    %58 = memref.load %arg0[%c10] : memref<18xf32, #tpu.memory_space<smem>>
    %59 = arith.cmpf one, %58, %58 : f32
    %60 = arith.cmpf one, %57, %57 : f32
    %61 = arith.cmpf ogt, %58, %57 : f32
    %true_14 = arith.constant true
    %62 = arith.xori %60, %true_14 : i1
    %63 = arith.andi %59, %62 : i1
    %64 = arith.ori %61, %63 : i1
    %65 = arith.select %64, %58, %57 : f32
    %c1_i32_15 = arith.constant 1 : i32
    %c0_i32_16 = arith.constant 0 : i32
    %66 = arith.select %64, %c1_i32_15, %c0_i32_16 : i32
    %c11 = arith.constant 11 : index
    %67 = memref.load %arg0[%c11] : memref<18xf32, #tpu.memory_space<smem>>
    %68 = arith.cmpf one, %67, %67 : f32
    %69 = arith.cmpf one, %65, %65 : f32
    %70 = arith.cmpf ogt, %67, %65 : f32
    %true_17 = arith.constant true
    %71 = arith.xori %69, %true_17 : i1
    %72 = arith.andi %68, %71 : i1
    %73 = arith.ori %70, %72 : i1
    %c2_i32_18 = arith.constant 2 : i32
    %74 = arith.select %73, %c2_i32_18, %66 : i32
    %c3_19 = arith.constant 3 : index
    %75 = memref.load %arg1[%c3_19] : memref<6xi32, #tpu.memory_space<smem>>
    memref.store %74, %arg1[%c3_19] : memref<6xi32, #tpu.memory_space<smem>>
    %c12 = arith.constant 12 : index
    %76 = memref.load %arg0[%c12] : memref<18xf32, #tpu.memory_space<smem>>
    %c13 = arith.constant 13 : index
    %77 = memref.load %arg0[%c13] : memref<18xf32, #tpu.memory_space<smem>>
    %78 = arith.cmpf one, %77, %77 : f32
    %79 = arith.cmpf one, %76, %76 : f32
    %80 = arith.cmpf ogt, %77, %76 : f32
    %true_20 = arith.constant true
    %81 = arith.xori %79, %true_20 : i1
    %82 = arith.andi %78, %81 : i1
    %83 = arith.ori %80, %82 : i1
    %84 = arith.select %83, %77, %76 : f32
    %c1_i32_21 = arith.constant 1 : i32
    %c0_i32_22 = arith.constant 0 : i32
    %85 = arith.select %83, %c1_i32_21, %c0_i32_22 : i32
    %c14 = arith.constant 14 : index
    %86 = memref.load %arg0[%c14] : memref<18xf32, #tpu.memory_space<smem>>
    %87 = arith.cmpf one, %86, %86 : f32
    %88 = arith.cmpf one, %84, %84 : f32
    %89 = arith.cmpf ogt, %86, %84 : f32
    %true_23 = arith.constant true
    %90 = arith.xori %88, %true_23 : i1
    %91 = arith.andi %87, %90 : i1
    %92 = arith.ori %89, %91 : i1
    %c2_i32_24 = arith.constant 2 : i32
    %93 = arith.select %92, %c2_i32_24, %85 : i32
    %c4_25 = arith.constant 4 : index
    %94 = memref.load %arg1[%c4_25] : memref<6xi32, #tpu.memory_space<smem>>
    memref.store %93, %arg1[%c4_25] : memref<6xi32, #tpu.memory_space<smem>>
    %c15 = arith.constant 15 : index
    %95 = memref.load %arg0[%c15] : memref<18xf32, #tpu.memory_space<smem>>
    %c16 = arith.constant 16 : index
    %96 = memref.load %arg0[%c16] : memref<18xf32, #tpu.memory_space<smem>>
    %97 = arith.cmpf one, %96, %96 : f32
    %98 = arith.cmpf one, %95, %95 : f32
    %99 = arith.cmpf ogt, %96, %95 : f32
    %true_26 = arith.constant true
    %100 = arith.xori %98, %true_26 : i1
    %101 = arith.andi %97, %100 : i1
    %102 = arith.ori %99, %101 : i1
    %103 = arith.select %102, %96, %95 : f32
    %c1_i32_27 = arith.constant 1 : i32
    %c0_i32_28 = arith.constant 0 : i32
    %104 = arith.select %102, %c1_i32_27, %c0_i32_28 : i32
    %c17 = arith.constant 17 : index
    %105 = memref.load %arg0[%c17] : memref<18xf32, #tpu.memory_space<smem>>
    %106 = arith.cmpf one, %105, %105 : f32
    %107 = arith.cmpf one, %103, %103 : f32
    %108 = arith.cmpf ogt, %105, %103 : f32
    %true_29 = arith.constant true
    %109 = arith.xori %107, %true_29 : i1
    %110 = arith.andi %106, %109 : i1
    %111 = arith.ori %108, %110 : i1
    %c2_i32_30 = arith.constant 2 : i32
    %112 = arith.select %111, %c2_i32_30, %104 : i32
    %c5_31 = arith.constant 5 : index
    %113 = memref.load %arg1[%c5_31] : memref<6xi32, #tpu.memory_space<smem>>
    memref.store %112, %arg1[%c5_31] : memref<6xi32, #tpu.memory_space<smem>>
    return
  }
}

</mosaic_0001>

<bundles_post_ra>
// kernel: pallas_argmax_last.1
= control target key start
LH: loop header
LB: loop body
LE: loop exit
PB: predicated region body
PF: predicated region fallthrough
CT: control target
= control target key end

     0   :  { %6 = vsyncpa [#allocation4], 0  ;;  %s358_s0 = inlined_call_operand.vmem [shape: f32[18], index: 0, kind: input, shape index: {}]   ;;  %s359_s1 = inlined_call_operand.hbm [shape: s32[6], index: 1, kind: output, shape index: {}]  }
   0x1   :  { %7 = vsyncpa [#allocation3], 0  ;;  %s13_s8 = sshll.u32 %s358_s0, 4  ;;  %s217_s9 = smov [#allocation2]   ;;  %s14_s8 = int_to_ptr.vmem [resolvable:$true] %s13_s8 }
   0x2   :  { %16 = dma.vmem_to_smem %s14_s8, 16, %s217_s9, [#allocation4]  }
   0x3   :  { %213 = dma.done.wait [#allocation4], 16  }
   0x4   :  { %214 = vsyncadd [#allocation4], 4294967280 }
   0x5   :  { %21 = sfence }
   0x6   :  { %s22_s10 = sld [smem:[#allocation2]] }
   0x7   :  { %s170_s11 = sld [smem:[#allocation2 + $0x1]] }
   0x8   :  { %s232_s12 = sld [smem:[#allocation2 + $0x2]] }
   0x9   :  { %s234_s13 = sld [smem:[#allocation2 + $0x3]] }
   0xa   :  { %s236_s14 = sld [smem:[#allocation2 + $0x4]] }
   0xb   :  { %s238_s0 = sld [smem:[#allocation2 + $0x5]] }
   0xc   :  { %p25_p0 = scmp.ne.f32.partialorder %s22_s10, %s22_s10  ;;  %s240_s15 = sld [smem:[#allocation2 + $0x6]] }
   0xd   :  { %p24_p1 = scmp.ne.f32.partialorder %s170_s11, %s170_s11  ;;  %p26_p2 = scmp.gt.f32.partialorder %s170_s11, %s22_s10 }
   0xe   :  { %p27_p3 = pneg %p25_p0  ;;  %s244_s16 = sld [smem:[#allocation2 + $0x7]] }
   0xf   :  { %p47_p4 = scmp.ne.f32.partialorder %s234_s13, %s234_s13  ;;  %p34_p7 = scmp.ne.f32.partialorder %s232_s12, %s232_s12 }
  0x10   :  { %p28_p5 = pnand %p27_p3, %p24_p1  ;;  %p46_p6 = scmp.ne.f32.partialorder %s236_s14, %s236_s14 }
  0x11   :  { %p49_p8 = pneg %p47_p4  ;;  %p48_p10 = scmp.gt.f32.partialorder %s236_s14, %s234_s13 }
  0x12   :  { %p29_p9 = pneg %p28_p5  ;;  %p69_p0 = scmp.ne.f32.partialorder %s240_s15, %s240_s15 }
  0x13   :  { %p50_p11 = pnand %p49_p8, %p46_p6  ;;  %s282_s21 = sld [smem:[#allocation2 + $0x8]] }
  0x14   :  { %p254_p13 = por %p29_p9, %p26_p2  ;;  %p68_p3 = scmp.ne.f32.partialorder %s244_s16, %s244_s16 }
  0x15   :  { %p51_p1 = pneg %p50_p11  ;;  %p71_p9 = pneg %p69_p0 }
  0x16   :  { %s369_s11 = smov (!%p254_p13, %s170_s11), %s22_s10  ;;  %s297_s23 = sld [smem:[#allocation2 + $0x9]] }
  0x17   :  { %s32_s18 = scalar_select %p254_p13, 1, 0 }
  0x18   :  { %p35_p4 = scmp.ne.f32.partialorder %s369_s11, %s369_s11  ;;  %p36_p5 = scmp.gt.f32.partialorder %s232_s12, %s369_s11 }
  0x19   :  { %p267_p2 = por %p51_p1, %p48_p10  ;;  %p72_p13 = pnand %p71_p9, %p68_p3 }
  0x1a   :  { %p37_p8 = pneg %p35_p4  ;;  %p364_p3 = scmp.ne.f32.partialorder %s238_s0, %s238_s0 }
  0x1b   :  { %s371_s14 = smov (!%p267_p2, %s236_s14), %s234_s13  ;;  %p73_p12 = pneg %p72_p13 }
  0x1c   :  { %p38_p11 = pnand %p37_p8, %p34_p7  ;;  %p57_p1 = scmp.ne.f32.partialorder %s371_s14, %s371_s14 }
  0x1d   :  { %s54_s20 = scalar_select %p267_p2, 1, 0 }
  0x1e   :  { %p39_p10 = pneg %p38_p11  ;;  %p59_p4 = pneg %p57_p1 }
  0x1f   :  { %p58_p0 = scmp.gt.f32.partialorder %s238_s0, %s371_s14  ;;  %p362_p7 = scmp.gt.f32.partialorder %s244_s16, %s240_s15 }
  0x20   :  { %p40_p6 = por %p39_p10, %p36_p5  ;;  %p60_p2 = pnand %p59_p4, %p364_p3 }
  0x21   :  { %p290_p8 = por %p73_p12, %p362_p7  ;;  %s179_s24 = sld [smem:[#allocation2 + $0xa]] }
  0x22   :  { %s373_s18 = smov (%p40_p6, %s32_s18), 2  ;;  %p61_p9 = pneg %p60_p2 }
  0x23   :  { %43 = sst [smem:[#allocation5]] %s373_s18  ;;  %s375_s16 = smov (!%p290_p8, %s244_s16), %s240_s15 }
  0x24   :  { %p62_p5 = por %p61_p9, %p58_p0  ;;  %p78_p12 = scmp.ne.f32.partialorder %s282_s21, %s282_s21 }
  0x25   :  { %s76_s25 = scalar_select %p290_p8, 1, 0 }
  0x26   :  { %s377_s20 = smov (%p62_p5, %s54_s20), 2  ;;  %p79_p11 = scmp.ne.f32.partialorder %s375_s16, %s375_s16 }
  0x27   :  { %65 = sst [smem:[#allocation5 + $0x1]] %s377_s20  ;;  %p90_p6 = scmp.ne.f32.partialorder %s179_s24, %s179_s24 }
  0x28   :  { %p81_p13 = pneg %p79_p11  ;;  %p91_p10 = scmp.ne.f32.partialorder %s297_s23, %s297_s23 }
  0x29   :  { %p80_p1 = scmp.gt.f32.partialorder %s282_s21, %s375_s16  ;;  %s310_s26 = sld [smem:[#allocation2 + $0xb]] }
  0x2a   :  { %p82_p4 = pnand %p81_p13, %p78_p12  ;;  %p93_p7 = pneg %p91_p10 }
  0x2b   :  { %s312_s27 = sld [smem:[#allocation2 + $0xc]]  ;;  %p92_p3 = scmp.gt.f32.partialorder %s179_s24, %s297_s23 }
  0x2c   :  { %p83_p0 = pneg %p82_p4  ;;  %p94_p8 = pnand %p93_p7, %p90_p6 }
  0x2d   :  { %s182_s28 = sld [smem:[#allocation2 + $0xd]]  ;;  %s159_s12 = sshll.u32 %s359_s1, 4  ;;  %s160_s12 = int_to_ptr.hbm [resolvable:$true] %s159_s12 }
  0x2e   :  { %p84_p2 = por %p83_p0, %p80_p1  ;;  %p95_p9 = pneg %p94_p8 }
  0x2f   :  { %p100_p12 = scmp.ne.f32.partialorder %s310_s26, %s310_s26  ;;  %s328_s2 = sld [smem:[#allocation2 + $0xe]] }
  0x30   :  { %s379_s25 = smov (%p84_p2, %s76_s25), 2  ;;  %p315_p5 = por %p95_p9, %p92_p3 }
  0x31   :  { %87 = sst [smem:[#allocation5 + $0x2]] %s379_s25  ;;  %p113_p11 = scmp.ne.f32.partialorder %s312_s27, %s312_s27 }
  0x32   :  { %s381_s24 = smov (!%p315_p5, %s179_s24), %s297_s23  ;;  %s184_s3 = sld [smem:[#allocation2 + $0xf]] }
  0x33   :  { %s98_s30 = scalar_select %p315_p5, 1, 0 }
  0x34   :  { %p101_p6 = scmp.ne.f32.partialorder %s381_s24, %s381_s24  ;;  %p102_p13 = scmp.gt.f32.partialorder %s310_s26, %s381_s24 }
  0x35   :  { %p112_p10 = scmp.ne.f32.partialorder %s182_s28, %s182_s28  ;;  %p115_p4 = pneg %p113_p11 }
  0x36   :  { %p103_p1 = pneg %p101_p6  ;;  %p114_p7 = scmp.gt.f32.partialorder %s182_s28, %s312_s27 }
  0x37   :  { %p116_p8 = pnand %p115_p4, %p112_p10  ;;  %s185_s4 = sld [smem:[#allocation2 + $0x10]] }
  0x38   :  { %p104_p0 = pnand %p103_p1, %p100_p12  ;;  %p135_p6 = scmp.ne.f32.partialorder %s184_s3, %s184_s3 }
  0x39   :  { %p117_p2 = pneg %p116_p8  ;;  %p122_p12 = scmp.ne.f32.partialorder %s328_s2, %s328_s2 }
  0x3a   :  { %p105_p3 = pneg %p104_p0  ;;  %p137_p1 = pneg %p135_p6 }
  0x3b   :  { %p335_p5 = por %p117_p2, %p114_p7  ;;  %s186_s7 = sld [smem:[#allocation2 + $0x11]] }
  0x3c   :  { %p106_p9 = por %p105_p3, %p102_p13  ;;  %s218_s13 = smov [#allocation5]  }
  0x3d   :  { %s385_s28 = smov (!%p335_p5, %s182_s28), %s312_s27  ;;  %p134_p11 = scmp.ne.f32.partialorder %s185_s4, %s185_s4 }
  0x3e   :  { %s383_s30 = smov (%p106_p9, %s98_s30), 2  ;;  %p123_p10 = scmp.ne.f32.partialorder %s385_s28, %s385_s28 }
  0x3f   :  { %109 = sst [smem:[#allocation5 + $0x3]] %s383_s30  ;;  %p136_p13 = scmp.gt.f32.partialorder %s185_s4, %s184_s3 }
  0x40   :  { %s120_s6 = scalar_select %p335_p5, 1, 0 }
  0x41   :  { %p125_p4 = pneg %p123_p10  ;;  %p138_p7 = pnand %p137_p1, %p134_p11 }
  0x42   :  { %p124_p0 = scmp.gt.f32.partialorder %s328_s2, %s385_s28  ;;  %p144_p6 = scmp.ne.f32.partialorder %s186_s7, %s186_s7 }
  0x43   :  { %p126_p8 = pnand %p125_p4, %p122_p12  ;;  %p139_p3 = pneg %p138_p7 }
  0x45   :  { %p127_p2 = pneg %p126_p8  ;;  %p347_p9 = por %p139_p3, %p136_p13 }
  0x47   :  { %p128_p5 = por %p127_p2, %p124_p0  ;;  %s387_s4 = smov (!%p347_p9, %s185_s4), %s184_s3 }
  0x48   :  { %p145_p10 = scmp.ne.f32.partialorder %s387_s4, %s387_s4  ;;  %p146_p11 = scmp.gt.f32.partialorder %s186_s7, %s387_s4 }
  0x49   :  { %s389_s6 = smov (%p128_p5, %s120_s6), 2 }
  0x4a   :  { %131 = sst [smem:[#allocation5 + $0x4]] %s389_s6  ;;  %p147_p1 = pneg %p145_p10 }
  0x4b   :  { %s142_s9 = scalar_select %p347_p9, 1, 0 }
  0x4c   :  { %p148_p4 = pnand %p147_p1, %p144_p6 }
  0x4e   :  { %p149_p12 = pneg %p148_p4 }
  0x50   :  { %p150_p13 = por %p149_p12, %p146_p11 }
  0x52   :  { %s391_s9 = smov (%p150_p13, %s142_s9), 2 }
  0x53   :  { %153 = sst [smem:[#allocation5 + $0x5]] %s391_s9 }
  0x54   :  { %162 = dma.smem_to_hbm %s218_s13, 16, %s160_s12, [#allocation3]  }
  0x55   :  { %215 = dma.done.wait [#allocation3], 16  }
  0x56   :  { %216 = vsyncadd [#allocation3], 4294967280 }
  0x57   :  { %167 = sfence }
  0x58   :  { %168 = vsyncpa [#allocation3], 1 }
  0x59   :  { %169 = vsyncpa [#allocation4], 1 }

</bundles_post_ra>
